<compile_context>
chip_gen: v7x
topology: tpu7x:2x2x1
jax: 0.10.0
libtpu: 0.0.40
codegen_flags: <defaults>
</compile_context>

<pallas_src>
import jax
import jax.numpy as jnp
from jax.experimental import pallas as pl
from jax.experimental.pallas import tpu as pltpu

VOCAB_SIZE = 49408   # CLIP BPE vocab size
BOS_TOKEN = 49406    # <start_of_text>
EOS_TOKEN = 49407    # <end_of_text>
CONTEXT_LEN = 128    # lane-aligned context length (CLIP uses 77; padded to 128)


def _round_up(x: int, m: int) -> int:
    return ((x + m - 1) // m) * m


def _tokenizer_kernel(codes_ref, out_ref):
    """Elementwise synthetic 'vocab lookup' for one batch tile.

    codes_ref: int8/int32 [TB, L] pre-encoded character codes (0 == padding)
    out_ref:   int32      [TB, L] token ids
    """
    # Upcast then clamp in-kernel (replaces the old wrapper-side clip/cast pass).
    codes = jnp.clip(codes_ref[...].astype(jnp.int32), 0, 126)
    tb, L = codes.shape
    pos = jax.lax.broadcasted_iota(jnp.int32, (tb, L), 1)

    # Position-salted hash into the vocab. Domain (codes <= 126, pos < 128)
    # keeps hashed <= 126*31 + 127*7 + 3 = 4798 < BOS_TOKEN, so no modulo.
    hashed = codes * 31 + pos * 7 + 3

    is_pad = codes == 0
    out_ref[...] = jnp.where(pos == 0, BOS_TOKEN,
                             jnp.where(is_pad, EOS_TOKEN, hashed))


def tokenize(char_codes: jax.Array, *, tile_b: int = 4096) -> jax.Array:
    """char_codes: int8/int32 [B, CONTEXT_LEN] (values 0..126, 0 = padding)
       -> token ids int32 [B, CONTEXT_LEN]. No wrapper-side HBM passes."""
    B, L = char_codes.shape
    assert L == CONTEXT_LEN

    # Sublane alignment for the row (batch) axis: 8 for 4-byte, 32 for 1-byte.
    itemsize = jnp.dtype(char_codes.dtype).itemsize
    row_align = max(8, 32 // itemsize)

    if B <= row_align:
        eff_tile = B  # block rows equal the full array extent (always legal)
    else:
        eff_tile = min(_round_up(tile_b, row_align), _round_up(B, row_align))
        # v7x megacore: keep >= 2 grid steps so ("parallel",) can shard the
        # grid across both TensorCores (no effect on v5e/v6e, 1 TC).
        eff_tile = min(eff_tile, _round_up(pl.cdiv(B, 2), row_align))

    grid = (pl.cdiv(B, eff_tile),)

    return pl.pallas_call(
        _tokenizer_kernel,
        out_shape=jax.ShapeDtypeStruct((B, L), jnp.int32),
        grid_spec=pltpu.PrefetchScalarGridSpec(
            num_scalar_prefetch=0,
            grid=grid,
            in_specs=[pl.BlockSpec((eff_tile, L), lambda i: (i, 0))],
            out_specs=pl.BlockSpec((eff_tile, L), lambda i: (i, 0)),
        ),
        compiler_params=pltpu.CompilerParams(
            dimension_semantics=("parallel",)
        ),
    )(char_codes)


class TokenizerWrapperPallas:
    """Mirrors TokenizerWrapper: forward(text) == tokenizer(text)."""

    def __init__(self, fmt=jnp.float32):
        self.format = fmt  # stored, unused in forward (matches PyTorch module)

    def __call__(self, char_codes: jax.Array) -> jax.Array:
        return tokenize(char_codes)


def _reference(codes: jax.Array) -> jax.Array:
    """Plain-JAX reference of the same synthetic mapping."""
    codes_i32 = jnp.clip(codes.astype(jnp.int32), 0, 126)
    L = codes.shape[1]
    pos = jnp.arange(L, dtype=jnp.int32)[None, :]
    hashed = codes_i32 * 31 + pos * 7 + 3
    return jnp.where(pos == 0, BOS_TOKEN,
                     jnp.where(codes_i32 == 0, EOS_TOKEN, hashed)).astype(jnp.int32)


if __name__ == "__main__":
    key = jax.random.PRNGKey(0)

    def make_codes(k, batch, dtype=jnp.int32):
        k1, k2 = jax.random.split(k)
        codes = jax.random.randint(
            k1, (batch, CONTEXT_LEN), minval=32, maxval=127, dtype=jnp.int32
        )
        lengths = jax.random.randint(
            k2, (batch, 1), minval=5, maxval=CONTEXT_LEN, dtype=jnp.int32
        )
        pos = jnp.arange(CONTEXT_LEN, dtype=jnp.int32)[None, :]
        return jnp.where(pos < lengths, codes, 0).astype(dtype)

    wrapper = TokenizerWrapperPallas()
    k1, k2, k3 = jax.random.split(key, 3)

    # int32 codes fed straight in, single full block.
    codes_a = make_codes(k1, 8)
    tokens_a = jax.block_until_ready(wrapper(codes_a))
    assert tokens_a.shape == (8, CONTEXT_LEN)
    assert tokens_a.dtype == jnp.int32
    assert bool(jnp.all(tokens_a == _reference(codes_a)))

    # Ragged batch -> pl.cdiv grid with a partial tail block (no pad, no slice).
    codes_b = make_codes(k2, 40)
    tokens_b = jax.block_until_ready(tokenize(codes_b, tile_b=32))
    assert tokens_b.shape == (40, CONTEXT_LEN)
    assert bool(jnp.all(tokens_b == _reference(codes_b)))

    # int8 codes fed straight through (no wrapper cast pass), 2-step grid.
    codes_c = make_codes(k3, 64, dtype=jnp.int8)
    tokens_c = jax.block_until_ready(tokenize(codes_c))
    assert tokens_c.shape == (64, CONTEXT_LEN)
    assert bool(jnp.all(tokens_c == _reference(codes_c)))

    print("KERNEL_OK")
</pallas_src>

<mosaic_0001>
module attributes {stable_mosaic.version = 11 : i64} {
  func.func @_tokenizer_kernel(%arg0: i32, %arg1: memref<8x128xi32, #tpu.memory_space<vmem>>, %arg2: memref<8x128xi32, #tpu.memory_space<vmem>>) attributes {dimension_semantics = [#tpu.dimension_semantics<parallel>], iteration_bounds = array<i64: 1>, scalar_prefetch = 0 : i64, scratch_operands = 0 : i64, tpu.core_type = #tpu.core_type<tc>, window_params = [{transform_indices = @transform_0, window_bounds = array<i64: 8, 128>}, {transform_indices = @transform_1, window_bounds = array<i64: 8, 128>}]} {
    %c0 = arith.constant 0 : index
    %c0_0 = arith.constant 0 : index
    %0 = vector.load %arg1[%c0, %c0_0] : memref<8x128xi32, #tpu.memory_space<vmem>>, vector<8x128xi32>
    %c0_i32 = arith.constant 0 : i32
    %c126_i32 = arith.constant 126 : i32
    %1 = vector.broadcast %c0_i32 : i32 to vector<8x128xi32>
    %2 = arith.maxsi %1, %0 : vector<8x128xi32>
    %3 = vector.broadcast %c126_i32 : i32 to vector<8x128xi32>
    %4 = arith.minsi %3, %2 : vector<8x128xi32>
    %5 = tpu.iota {dimensions = array<i32: 1>} : vector<8x128xi32>
    %c31_i32 = arith.constant 31 : i32
    %6 = vector.broadcast %c31_i32 : i32 to vector<8x128xi32>
    %7 = arith.muli %4, %6 : vector<8x128xi32>
    %c7_i32 = arith.constant 7 : i32
    %8 = vector.broadcast %c7_i32 : i32 to vector<8x128xi32>
    %9 = arith.muli %5, %8 : vector<8x128xi32>
    %10 = arith.addi %7, %9 : vector<8x128xi32>
    %c3_i32 = arith.constant 3 : i32
    %11 = vector.broadcast %c3_i32 : i32 to vector<8x128xi32>
    %12 = arith.addi %10, %11 : vector<8x128xi32>
    %c0_i32_1 = arith.constant 0 : i32
    %13 = vector.broadcast %c0_i32_1 : i32 to vector<8x128xi32>
    %14 = arith.cmpi eq, %4, %13 : vector<8x128xi32>
    %c0_i32_2 = arith.constant 0 : i32
    %15 = vector.broadcast %c0_i32_2 : i32 to vector<8x128xi32>
    %16 = arith.cmpi eq, %5, %15 : vector<8x128xi32>
    %c49407_i32 = arith.constant 49407 : i32
    %17 = vector.broadcast %c49407_i32 : i32 to vector<8x128xi32>
    %18 = arith.select %14, %17, %12 : vector<8x128xi1>, vector<8x128xi32>
    %c49406_i32 = arith.constant 49406 : i32
    %19 = vector.broadcast %c49406_i32 : i32 to vector<8x128xi32>
    %20 = arith.select %16, %19, %18 : vector<8x128xi1>, vector<8x128xi32>
    %c0_3 = arith.constant 0 : index
    %c0_4 = arith.constant 0 : index
    %21 = vector.load %arg2[%c0_3, %c0_4] : memref<8x128xi32, #tpu.memory_space<vmem>>, vector<8x128xi32>
    tpu.vector_store %arg2[%c0_3, %c0_4], %20 {strides = array<i32>} : memref<8x128xi32, #tpu.memory_space<vmem>>, vector<8x128xi32>,
    return
  }
  func.func @transform_0(%arg0: i32) -> (i32, i32) {
    %c0_i32 = arith.constant 0 : i32
    %c0_i32_0 = arith.constant 0 : i32
    return %arg0, %c0_i32 : i32, i32
  }
  func.func @transform_1(%arg0: i32) -> (i32, i32) {
    %c0_i32 = arith.constant 0 : i32
    %c0_i32_0 = arith.constant 0 : i32
    return %arg0, %c0_i32 : i32, i32
  }
}

</mosaic_0001>

<bundles_post_ra>
// kernel: tpu_custom_call.1
= control target key start
LH: loop header
LB: loop body
LE: loop exit
PB: predicated region body
PF: predicated region fallthrough
CT: control target
= control target key end

     0   :  { %6 = vsyncpa [#allocation3], 0  ;;  %s138_s0 = inlined_call_operand.hbm [shape: s32[8,128], index: 0, kind: input, shape index: {}]   ;;  %s139_s1 = inlined_call_operand.hbm [shape: s32[8,128], index: 1, kind: output, shape index: {}]  }
   0x1   :  { %7 = vsyncpa [#allocation4], 0  ;;  %s102_s6 = smov [#allocation2]   ;;  %s54_s10 = scalar_lea.hbm %s138_s0, 128 }
   0x2   :  { %s14_s7 = sshll.u32 %s102_s6, 4  ;;  %p55_p0 = scmp.ne.s32.totalorder %s138_s0, %s54_s10  ;;  %s15_s7 = int_to_ptr.vmem [resolvable:$true] %s14_s7 }
   0x3   :  { %p58_p1 = scmp.lt.u32.totalorder %s54_s10, %s138_s0 }
   0x5   :  { %p60_p2 = pnand %p58_p1, %p55_p0 }
   0x7   :  { %63 = shalt.err (!%p60_p2)
}
   0x8   :  { %s64_s15 = scalar_lea.vmem %s15_s7, 128  ;;  %p69_p4 = scmp.lt.s32.totalorder %s15_s7, %s15_s7 }
   0x9   :  { %p65_p3 = scmp.ne.s32.totalorder %s15_s7, %s64_s15  ;;  %p70_p5 = scmp.lt.s32.totalorder %s64_s15, %s64_s15 }
   0xb   :  { %p71_p6 = por %p70_p5, %p69_p4 }
   0xd   :  { %p72_p7 = pnand %p71_p6, %p65_p3 }
   0xf   :  { %75 = shalt.err (!%p72_p7)
}
  0x10   :  { %17 = dma.hbm_to_vmem [thread:$0]  %s138_s0, 128, %s15_s7, [#allocation3]  }
  0x11   :  { %98 = dma.done.wait [#allocation3], 128  }
  0x12   :  { %99 = vsyncadd [#allocation3], 4294967168  ;;  %v26_v0 = vlaneseq  ;;  %v21_v2 = vld [vmem:[#allocation2] sm:$0xff]  ;;  %s103_s18 = smov [#allocation5]  }
  0x13   :  { %vm22_vm0 = vcmp.gt.s32.totalorder %v21_v2, 0  ;;  %s43_s19 = sshll.u32 %s103_s18, 4  ;;  %s44_s19 = int_to_ptr.vmem [resolvable:$true] %s43_s19 }
  0x14   :  { %v27_v1 = vand.u32 127, %v26_v0  ;;  %v23_v3 = vsel %vm22_vm0, %v21_v2, 0  ;;  %s76_s0 = scalar_lea.vmem %s44_s19, 128  ;;  %p81_p9 = scmp.lt.s32.totalorder %s44_s19, %s44_s19 }
  0x15   :  { %vm24_vm1 = vcmp.lt.s32.totalorder %v23_v3, 126  ;;  %p77_p8 = scmp.ne.s32.totalorder %s44_s19, %s76_s0  ;;  %p82_p10 = scmp.lt.s32.totalorder %s76_s0, %s76_s0 }
  0x16   :  { %v29_v4 = vmul.u32 7, %v27_v1  ;;  %v25_v5 = vsel %vm24_vm1, %v23_v3, 126  ;;  %vm33_vm3 = vcmp.eq.s32.totalorder %v27_v1, 0 }
  0x17   :  { %v28_v6 = vmul.u32 31, %v25_v5  ;;  %vm32_vm2 = vcmp.eq.s32.totalorder %v25_v5, 0  ;;  %p83_p11 = por %p82_p10, %p81_p9 }
  0x19   :  { %v30_v7 = vadd.s32 %v29_v4, %v28_v6  ;;  %p84_p12 = pnand %p83_p11, %p77_p8 }
  0x1b   :  { %v31_v8 = vadd.s32 3, %v30_v7 }
  0x1d   :  { %v34_v9 = vsel %vm32_vm2, 49407, %v31_v8 }
  0x1e   :  { %v35_v10 = vsel %vm33_vm3, 49406, %v34_v9 }
  0x1f   :  { %36 = vst [vmem:[#allocation5] sm:$0xff] %v35_v10 }
  0x20   :  { %87 = shalt.err (!%p84_p12)
}
  0x21   :  { %s88_s22 = scalar_lea.hbm %s139_s1, 128 }
  0x22   :  { %p89_p13 = scmp.ne.s32.totalorder %s139_s1, %s88_s22  ;;  %p92_p0 = scmp.lt.u32.totalorder %s88_s22, %s139_s1 }
  0x24   :  { %p94_p1 = pnand %p92_p0, %p89_p13 }
  0x26   :  { %97 = shalt.err (!%p94_p1)
}
  0x27   :  { %46 = dma.vmem_to_hbm [thread:$0]  %s44_s19, 128, %s139_s1, [#allocation4]  }
  0x28   :  { %100 = dma.done.wait [#allocation4], 128  }
  0x29   :  { %101 = vsyncadd [#allocation4], 4294967168 }
  0x2a   :  { %50 = vsyncpa [#allocation3], 1 }
  0x2b   :  { %51 = vsyncpa [#allocation4], 1 }

</bundles_post_ra>
